<compile_context>
chip_gen: v7x
topology: tpu7x:2x2x1
jax: 0.10.0
libtpu: 0.0.40
codegen_flags: <defaults>
</compile_context>

<pallas_src>
import functools

import jax
import jax.numpy as jnp
from jax.experimental import pallas as pl
from jax.experimental.pallas import tpu as pltpu

KERNEL_SIZE = 5    # Interactor `kernel` (first conv); second conv is fixed at 3
HIDDEN = 2         # hidden_size multiplier
NEG_SLOPE = 0.01   # LeakyReLU negative slope
# TODO(synk): groups > 1 (grouped Conv1d) is not implemented (module default groups=1).


# ---------------------------------------------------------------------------
# Pallas kernel: one lane-packed tile of B_tile batch segments per grid step.
# ---------------------------------------------------------------------------
def _level_scinet_kernel(xs_ref, w1_ref, b1_ref, w2_ref, b2_ref, out_ref,
                         *, L, Lp, pad_l, pad_r, k1, k2):
    """xs_ref : (2C, N), N = B_tile*Lp.  Rows [0,C)=x_even, [C,2C)=x_odd, each
       batch segment already replication-padded; real values at local lane
       positions [pad_l, pad_l+L).
       w1_ref : (2, 2*Chid, k1*2C)   fused im2col conv1 weights (pass 0 / 1)
       b1_ref : (2, 2*Chid, 1)
       w2_ref : (2, 2C, k2*2*Chid)   fused conv2 weights (pass 1 has -P folded in)
       b2_ref : (2, 2C, 1)
       out_ref: (2C, N).  Rows [0,C)=even_update, [C,2C)=odd_update, valid at
       local positions [pad_l, pad_l+L)."""
    x = xs_ref[...].astype(jnp.float32)
    n = x.shape[-1]

    def shift(a, s):
        # result[:, i] = a[:, (i + s) % n]  (lane rotate; wrap-around only ever
        # lands on pad/garbage lanes, never on a valid output position).
        s = s % n
        if s == 0:
            return a
        return jnp.concatenate([a[:, s:], a[:, :s]], axis=1)

    def fused_conv_pair(inp, p):
        # (ReplicationPad1d ∘) Conv1d(k1) -> LeakyReLU -> Dropout(eval)
        # -> Conv1d(k2) -> Tanh, for TWO branches at once via block weights.
        c1 = (k1 - 1) // 2
        cols = jnp.concatenate([shift(inp, k - c1) for k in range(k1)], axis=0)
        h = jnp.dot(w1_ref[p], cols, preferred_element_type=jnp.float32) + b1_ref[p]
        h = jnp.where(h > 0, h, NEG_SLOPE * h)          # LeakyReLU(0.01)
        # TODO(synk): nn.Dropout treated as identity (inference / eval mode).
        c2 = (k2 - 1) // 2
        cols2 = jnp.concatenate([shift(h, j - c2) for j in range(k2)], axis=0)
        o = jnp.dot(w2_ref[p], cols2, preferred_element_type=jnp.float32) + b2_ref[p]
        return jnp.tanh(o)

    # Pass 0: rows [0,C) = psi(x_odd), rows [C,2C) = phi(x_even).
    g1 = fused_conv_pair(x, 0)
    # c = x_even * exp(psi(x_odd)); d = x_odd * exp(phi(x_even))  ->  dc = [c ; d]
    dc = x * jnp.exp(g1)

    # In-kernel ReplicationPad1d of every Lp-wide d/c segment: refill the edge
    # lanes from the segment's first / last valid position (shifts + selects).
    pos = jax.lax.broadcasted_iota(jnp.int32, x.shape, 1) % Lp
    dcp = dc
    for m in range(1, pad_l + 1):
        dcp = jnp.where(pos == pad_l - m, shift(dc, m), dcp)
    for m in range(1, pad_r + 1):
        dcp = jnp.where(pos == pad_l + L - 1 + m, shift(dc, -m), dcp)

    # Pass 1: rows [0,C) = U(d), rows [C,2C) = -P(c)  (sign folded into weights).
    # even_update = c + U(d); odd_update = d - P(c)  ==>  out = dc + g2.
    g2 = fused_conv_pair(dcp, 1)
    out_ref[...] = (dcp + g2).astype(out_ref.dtype)


# ---------------------------------------------------------------------------
# Wrapper helpers
# ---------------------------------------------------------------------------
def _fuse_conv_weights(w_top, w_bot, cross):
    """Fuse two branches' torch Conv1d weights (Cout, Cin, K) into one im2col
    weight (2*Cout, K*2*Cin).  Output rows [0,Cout) use w_top, [Cout,2Cout) use
    w_bot.  cross=True: top block reads the SECOND half of the stacked input
    channels (and bottom the first half); cross=False: block-diagonal.
    Column index = k*(2*Cin) + cin, matching the in-kernel stacking order."""
    z = jnp.zeros_like(w_top)
    if cross:
        top = jnp.concatenate([z, w_top], axis=1)
        bot = jnp.concatenate([w_bot, z], axis=1)
    else:
        top = jnp.concatenate([w_top, z], axis=1)
        bot = jnp.concatenate([z, w_bot], axis=1)
    w = jnp.concatenate([top, bot], axis=0)            # (2Cout, 2Cin, K)
    co2, ci2, k = w.shape
    return jnp.transpose(w, (0, 2, 1)).reshape(co2, k * ci2).astype(jnp.float32)


def _pick_b_tile(batch, lp, max_lanes=2048):
    """Largest whole-batch lane tile whose lane width is a multiple of 128
    (preferring a grid of >= 2 steps for the v7x megacore); otherwise fall back
    to one block spanning the full array (always a legal block shape)."""
    cands = [bt for bt in range(1, batch + 1)
             if batch % bt == 0 and (bt * lp) % 128 == 0 and bt * lp <= max_lanes]
    if not cands:
        return batch
    multi = [bt for bt in cands if batch // bt >= 2]
    return max(multi) if multi else max(cands)


def level_scinet_forward(x, params):
    """x: (B, T, C) float32.  Returns (even_update, odd_update): (B, T//2, C)."""
    B, T, C = x.shape
    assert T % 2 == 0
    L = T // 2

    w1_phi, b1_phi, w2_phi, b2_phi = params["phi"]
    w1_psi, b1_psi, w2_psi, b2_psi = params["psi"]
    w1_u, b1_u, w2_u, b2_u = params["U"]
    w1_p, b1_p, w2_p, b2_p = params["P"]
    k1 = w1_phi.shape[-1]
    k2 = w2_phi.shape[-1]

    if k1 % 2 == 0:
        pad_l = (k1 - 2) // 2 + 1
        pad_r = k1 // 2 + 1
    else:
        pad_l = pad_r = (k1 - 1) // 2 + 1
    Lp = L + pad_l + pad_r

    # ---- layout prep: (B,T,C) -> channel-stacked [x_even; x_odd], per-batch
    #      replication-padded, lane-packed (2C, B*Lp).
    xt = jnp.transpose(x, (2, 0, 1))                                 # (C, B, T)
    xs = jnp.concatenate([xt[:, :, 0::2], xt[:, :, 1::2]], axis=0)   # (2C, B, L)
    xs = jnp.pad(xs, ((0, 0), (0, 0), (pad_l, pad_r)), mode="edge")  # (2C, B, Lp)
    xs = xs.reshape(2 * C, B * Lp).astype(jnp.float32)

    # ---- consolidate 16 weight/bias tensors into 4 stacked arrays.
    # Pass 0 -> [psi(x_odd); phi(x_even)];  pass 1 -> [U(d); -P(c)]
    # (P's conv2 weight and bias are negated; tanh(-z) = -tanh(z)).
    w1 = jnp.stack([_fuse_conv_weights(w1_psi, w1_phi, cross=True),
                    _fuse_conv_weights(w1_u, w1_p, cross=True)])     # (2, 2Chid, k1*2C)
    b1 = jnp.stack([jnp.concatenate([b1_psi, b1_phi]),
                    jnp.concatenate([b1_u, b1_p])]).astype(jnp.float32)[:, :, None]
    w2 = jnp.stack([_fuse_conv_weights(w2_psi, w2_phi, cross=False),
                    _fuse_conv_weights(w2_u, -w2_p, cross=False)])   # (2, 2C, k2*2Chid)
    b2 = jnp.stack([jnp.concatenate([b2_psi, b2_phi]),
                    jnp.concatenate([b2_u, -b2_p])]).astype(jnp.float32)[:, :, None]

    # ---- grid / block setup: lane width = B_tile * Lp.
    b_tile = _pick_b_tile(B, Lp)
    tile_n = b_tile * Lp
    grid = (B // b_tile,)

    data_spec = pl.BlockSpec((2 * C, tile_n), lambda i: (0, i))
    w_spec = lambda a: pl.BlockSpec(a.shape, lambda i: (0, 0, 0))

    kernel = functools.partial(_level_scinet_kernel, L=L, Lp=Lp,
                               pad_l=pad_l, pad_r=pad_r, k1=k1, k2=k2)

    out = pl.pallas_call(
        kernel,
        out_shape=jax.ShapeDtypeStruct((2 * C, B * Lp), x.dtype),
        grid=grid,
        in_specs=[data_spec, w_spec(w1), w_spec(b1), w_spec(w2), w_spec(b2)],
        out_specs=data_spec,
        compiler_params=pltpu.CompilerParams(
            dimension_semantics=("parallel",),
            vmem_limit_bytes=32 * 1024 * 1024),
    )(xs, w1, b1, w2, b2)

    out = out.reshape(2 * C, B, Lp)[:, :, pad_l:pad_l + L]           # (2C, B, L)
    even_u = jnp.transpose(out[:C], (1, 2, 0))                       # (B, L, C)
    odd_u = jnp.transpose(out[C:], (1, 2, 0))
    return even_u, odd_u


# ---------------------------------------------------------------------------
# Pure-JAX reference (correctness check)
# ---------------------------------------------------------------------------
def _ref_subnet(x, w1, b1, w2, b2, pad_l, pad_r):
    xp = jnp.concatenate(
        [jnp.repeat(x[:, :, :1], pad_l, axis=2), x,
         jnp.repeat(x[:, :, -1:], pad_r, axis=2)], axis=2)
    h = jax.lax.conv_general_dilated(
        xp, w1, (1,), "VALID",
        dimension_numbers=("NCH", "OIH", "NCH")) + b1[None, :, None]
    h = jnp.where(h > 0, h, NEG_SLOPE * h)
    o = jax.lax.conv_general_dilated(
        h, w2, (1,), "VALID",
        dimension_numbers=("NCH", "OIH", "NCH")) + b2[None, :, None]
    return jnp.tanh(o)


def _ref_forward(x, params):
    k = params["phi"][0].shape[-1]
    if k % 2 == 0:
        pad_l = (k - 2) // 2 + 1
        pad_r = k // 2 + 1
    else:
        pad_l = pad_r = (k - 1) // 2 + 1
    x_even = jnp.transpose(x[:, ::2, :], (0, 2, 1))
    x_odd = jnp.transpose(x[:, 1::2, :], (0, 2, 1))
    phi = _ref_subnet(x_even, *params["phi"], pad_l, pad_r)
    psi = _ref_subnet(x_odd, *params["psi"], pad_l, pad_r)
    d = x_odd * jnp.exp(phi)
    c = x_even * jnp.exp(psi)
    even_u = c + _ref_subnet(d, *params["U"], pad_l, pad_r)
    odd_u = d - _ref_subnet(c, *params["P"], pad_l, pad_r)
    return jnp.transpose(even_u, (0, 2, 1)), jnp.transpose(odd_u, (0, 2, 1))


def _make_params(key, c, hidden, k1):
    def branch(k):
        ka, kb, kc, kd = jax.random.split(k, 4)
        chid = c * hidden
        w1 = jax.random.normal(ka, (chid, c, k1), jnp.float32) * 0.2
        b1 = jax.random.normal(kb, (chid,), jnp.float32) * 0.1
        w2 = jax.random.normal(kc, (c, chid, 3), jnp.float32) * 0.2
        b2 = jax.random.normal(kd, (c,), jnp.float32) * 0.1
        return (w1, b1, w2, b2)
    return {name: branch(kb)
            for name, kb in zip(("phi", "psi", "U", "P"), jax.random.split(key, 4))}


# ---------------------------------------------------------------------------
if __name__ == "__main__":
    C, T = 4, 16
    key = jax.random.PRNGKey(0)
    kparams, kx_small, kx_big = jax.random.split(key, 3)
    params = _make_params(kparams, C, HIDDEN, KERNEL_SIZE)

    fwd = jax.jit(level_scinet_forward)

    # Small case (single full-array block) + a batch large enough to exercise
    # the 128-multiple lane tiles and a 2-step parallel grid.
    for B, kx in ((2, kx_small), (128, kx_big)):
        x = jax.random.normal(kx, (B, T, C), jnp.float32)
        even_u, odd_u = fwd(x, params)
        even_u = jax.block_until_ready(even_u)
        odd_u = jax.block_until_ready(odd_u)

        ref_even, ref_odd = _ref_forward(x, params)
        assert even_u.shape == (B, T // 2, C) and odd_u.shape == (B, T // 2, C)
        assert jnp.allclose(even_u, ref_even, rtol=5e-4, atol=5e-4), (
            "even mismatch", float(jnp.max(jnp.abs(even_u - ref_even))))
        assert jnp.allclose(odd_u, ref_odd, rtol=5e-4, atol=5e-4), (
            "odd mismatch", float(jnp.max(jnp.abs(odd_u - ref_odd))))

    print("KERNEL_OK")
</pallas_src>

<mosaic_0001>
module attributes {stable_mosaic.version = 11 : i64} {
  func.func @_level_scinet_kernel(%arg0: i32, %arg1: memref<8x28xf32, #tpu.memory_space<vmem>>, %arg2: memref<2x16x40xf32, #tpu.memory_space<vmem>>, %arg3: memref<2x16x1xf32, #tpu.memory_space<vmem>>, %arg4: memref<2x8x48xf32, #tpu.memory_space<vmem>>, %arg5: memref<2x8x1xf32, #tpu.memory_space<vmem>>, %arg6: memref<8x28xf32, #tpu.memory_space<vmem>>) attributes {dimension_semantics = [#tpu.dimension_semantics<parallel>], iteration_bounds = array<i64: 1>, scalar_prefetch = 0 : i64, scratch_operands = 0 : i64, tpu.core_type = #tpu.core_type<tc>, window_params = [{transform_indices = @transform_0, window_bounds = array<i64: 8, 28>}, {pipeline_mode = #tpu.pipeline_mode<synchronous>, transform_indices = @transform_1, window_bounds = array<i64: 2, 16, 40>}, {pipeline_mode = #tpu.pipeline_mode<synchronous>, transform_indices = @transform_2, window_bounds = array<i64: 2, 16, 1>}, {pipeline_mode = #tpu.pipeline_mode<synchronous>, transform_indices = @transform_3, window_bounds = array<i64: 2, 8, 48>}, {pipeline_mode = #tpu.pipeline_mode<synchronous>, transform_indices = @transform_4, window_bounds = array<i64: 2, 8, 1>}, {transform_indices = @transform_5, window_bounds = array<i64: 8, 28>}]} {
    %c0 = arith.constant 0 : index
    %c0_0 = arith.constant 0 : index
    %0 = vector.load %arg1[%c0, %c0_0] : memref<8x28xf32, #tpu.memory_space<vmem>>, vector<8x28xf32>
    %1 = vector.extract_strided_slice %0 {offsets = [0, 26], sizes = [8, 2], strides = [1, 1]} : vector<8x28xf32> to vector<8x2xf32>
    %2 = vector.extract_strided_slice %0 {offsets = [0, 0], sizes = [8, 26], strides = [1, 1]} : vector<8x28xf32> to vector<8x26xf32>
    %3 = tpu.concatenate %1, %2 in 1 : vector<8x2xf32>, vector<8x26xf32> -> vector<8x28xf32>
    %4 = vector.extract_strided_slice %0 {offsets = [0, 27], sizes = [8, 1], strides = [1, 1]} : vector<8x28xf32> to vector<8x1xf32>
    %5 = vector.extract_strided_slice %0 {offsets = [0, 0], sizes = [8, 27], strides = [1, 1]} : vector<8x28xf32> to vector<8x27xf32>
    %6 = tpu.concatenate %4, %5 in 1 : vector<8x1xf32>, vector<8x27xf32> -> vector<8x28xf32>
    %7 = vector.extract_strided_slice %0 {offsets = [0, 1], sizes = [8, 27], strides = [1, 1]} : vector<8x28xf32> to vector<8x27xf32>
    %8 = vector.extract_strided_slice %0 {offsets = [0, 0], sizes = [8, 1], strides = [1, 1]} : vector<8x28xf32> to vector<8x1xf32>
    %9 = tpu.concatenate %7, %8 in 1 : vector<8x27xf32>, vector<8x1xf32> -> vector<8x28xf32>
    %10 = vector.extract_strided_slice %0 {offsets = [0, 2], sizes = [8, 26], strides = [1, 1]} : vector<8x28xf32> to vector<8x26xf32>
    %11 = vector.extract_strided_slice %0 {offsets = [0, 0], sizes = [8, 2], strides = [1, 1]} : vector<8x28xf32> to vector<8x2xf32>
    %12 = tpu.concatenate %10, %11 in 1 : vector<8x26xf32>, vector<8x2xf32> -> vector<8x28xf32>
    %13 = tpu.concatenate %3, %6, %0, %9, %12 in 0 : vector<8x28xf32>, vector<8x28xf32>, vector<8x28xf32>, vector<8x28xf32>, vector<8x28xf32> -> vector<40x28xf32>
    %c0_1 = arith.constant 0 : index
    %c0_2 = arith.constant 0 : index
    %c0_3 = arith.constant 0 : index
    %14 = vector.load %arg2[%c0_1, %c0_2, %c0_3] : memref<2x16x40xf32, #tpu.memory_space<vmem>>, vector<1x16x40xf32>
    %15 = vector.shape_cast %14 : vector<1x16x40xf32> to vector<16x40xf32>
    %cst = arith.constant dense<0.000000e+00> : vector<16x28xf32>
    %16 = tpu.matmul %15, %13, %cst {dimension_numbers = #tpu.dot_dimension_numbers<[1], [0], [0], [1], [0, 0, 1, 1], [], []>} : vector<16x40xf32>, vector<40x28xf32>, vector<16x28xf32> -> vector<16x28xf32>
    %c0_4 = arith.constant 0 : index
    %c0_5 = arith.constant 0 : index
    %c0_6 = arith.constant 0 : index
    %17 = vector.load %arg3[%c0_4, %c0_5, %c0_6] : memref<2x16x1xf32, #tpu.memory_space<vmem>>, vector<1x16x1xf32>
    %18 = vector.shape_cast %17 : vector<1x16x1xf32> to vector<16x1xf32>
    %19 = vector.broadcast %18 : vector<16x1xf32> to vector<16x28xf32>
    %20 = arith.addf %16, %19 : vector<16x28xf32>
    %cst_7 = arith.constant 0.000000e+00 : f32
    %21 = vector.broadcast %cst_7 : f32 to vector<16x28xf32>
    %22 = arith.cmpf ogt, %20, %21 : vector<16x28xf32>
    %cst_8 = arith.constant 0.00999999977 : f32
    %23 = vector.broadcast %cst_8 : f32 to vector<16x28xf32>
    %24 = arith.mulf %23, %20 : vector<16x28xf32>
    %25 = arith.select %22, %20, %24 : vector<16x28xi1>, vector<16x28xf32>
    %26 = vector.extract_strided_slice %25 {offsets = [0, 27], sizes = [16, 1], strides = [1, 1]} : vector<16x28xf32> to vector<16x1xf32>
    %27 = vector.extract_strided_slice %25 {offsets = [0, 0], sizes = [16, 27], strides = [1, 1]} : vector<16x28xf32> to vector<16x27xf32>
    %28 = tpu.concatenate %26, %27 in 1 : vector<16x1xf32>, vector<16x27xf32> -> vector<16x28xf32>
    %29 = vector.extract_strided_slice %25 {offsets = [0, 1], sizes = [16, 27], strides = [1, 1]} : vector<16x28xf32> to vector<16x27xf32>
    %30 = vector.extract_strided_slice %25 {offsets = [0, 0], sizes = [16, 1], strides = [1, 1]} : vector<16x28xf32> to vector<16x1xf32>
    %31 = tpu.concatenate %29, %30 in 1 : vector<16x27xf32>, vector<16x1xf32> -> vector<16x28xf32>
    %32 = tpu.concatenate %28, %25, %31 in 0 : vector<16x28xf32>, vector<16x28xf32>, vector<16x28xf32> -> vector<48x28xf32>
    %c0_9 = arith.constant 0 : index
    %c0_10 = arith.constant 0 : index
    %c0_11 = arith.constant 0 : index
    %33 = vector.load %arg4[%c0_9, %c0_10, %c0_11] : memref<2x8x48xf32, #tpu.memory_space<vmem>>, vector<1x8x48xf32>
    %34 = vector.shape_cast %33 : vector<1x8x48xf32> to vector<8x48xf32>
    %cst_12 = arith.constant dense<0.000000e+00> : vector<8x28xf32>
    %35 = tpu.matmul %34, %32, %cst_12 {dimension_numbers = #tpu.dot_dimension_numbers<[1], [0], [0], [1], [0, 0, 1, 1], [], []>} : vector<8x48xf32>, vector<48x28xf32>, vector<8x28xf32> -> vector<8x28xf32>
    %c0_13 = arith.constant 0 : index
    %c0_14 = arith.constant 0 : index
    %c0_15 = arith.constant 0 : index
    %36 = vector.load %arg5[%c0_13, %c0_14, %c0_15] : memref<2x8x1xf32, #tpu.memory_space<vmem>>, vector<1x8x1xf32>
    %37 = vector.shape_cast %36 : vector<1x8x1xf32> to vector<8x1xf32>
    %38 = vector.broadcast %37 : vector<8x1xf32> to vector<8x28xf32>
    %39 = arith.addf %35, %38 : vector<8x28xf32>
    %40 = math.tanh %39 : vector<8x28xf32>
    %41 = math.exp %40 : vector<8x28xf32>
    %42 = arith.mulf %0, %41 : vector<8x28xf32>
    %43 = tpu.iota {dimensions = array<i32: 1>} : vector<8x28xi32>
    %c14_i32 = arith.constant 14 : i32
    %c0_i32 = arith.constant 0 : i32
    %44 = arith.cmpi eq, %c14_i32, %c0_i32 : i32
    %c1_i32 = arith.constant 1 : i32
    %45 = arith.select %44, %c1_i32, %c14_i32 : i32
    %46 = vector.broadcast %45 : i32 to vector<8x28xi32>
    %47 = arith.remsi %43, %46 : vector<8x28xi32>
    %c0_i32_16 = arith.constant 0 : i32
    %48 = vector.broadcast %c0_i32_16 : i32 to vector<8x28xi32>
    %49 = arith.cmpi ne, %47, %48 : vector<8x28xi32>
    %c0_i32_17 = arith.constant 0 : i32
    %50 = vector.broadcast %c0_i32_17 : i32 to vector<8x28xi32>
    %51 = arith.cmpi slt, %47, %50 : vector<8x28xi32>
    %c0_i32_18 = arith.constant 0 : i32
    %52 = arith.cmpi slt, %45, %c0_i32_18 : i32
    %53 = vector.broadcast %52 : i1 to vector<8x28xi1>
    %54 = vector.broadcast %53 : vector<8x28xi1> to vector<8x28xi1>
    %55 = arith.xori %51, %54 : vector<8x28xi1>
    %56 = arith.andi %55, %49 : vector<8x28xi1>
    %57 = vector.broadcast %45 : i32 to vector<8x28xi32>
    %58 = arith.addi %47, %57 : vector<8x28xi32>
    %59 = arith.select %56, %58, %47 : vector<8x28xi1>, vector<8x28xi32>
    %c2_i32 = arith.constant 2 : i32
    %60 = vector.broadcast %c2_i32 : i32 to vector<8x28xi32>
    %61 = arith.cmpi eq, %59, %60 : vector<8x28xi32>
    %62 = vector.extract_strided_slice %42 {offsets = [0, 1], sizes = [8, 27], strides = [1, 1]} : vector<8x28xf32> to vector<8x27xf32>
    %63 = vector.extract_strided_slice %42 {offsets = [0, 0], sizes = [8, 1], strides = [1, 1]} : vector<8x28xf32> to vector<8x1xf32>
    %64 = tpu.concatenate %62, %63 in 1 : vector<8x27xf32>, vector<8x1xf32> -> vector<8x28xf32>
    %65 = arith.select %61, %64, %42 : vector<8x28xi1>, vector<8x28xf32>
    %c1_i32_19 = arith.constant 1 : i32
    %66 = vector.broadcast %c1_i32_19 : i32 to vector<8x28xi32>
    %67 = arith.cmpi eq, %59, %66 : vector<8x28xi32>
    %68 = vector.extract_strided_slice %42 {offsets = [0, 2], sizes = [8, 26], strides = [1, 1]} : vector<8x28xf32> to vector<8x26xf32>
    %69 = vector.extract_strided_slice %42 {offsets = [0, 0], sizes = [8, 2], strides = [1, 1]} : vector<8x28xf32> to vector<8x2xf32>
    %70 = tpu.concatenate %68, %69 in 1 : vector<8x26xf32>, vector<8x2xf32> -> vector<8x28xf32>
    %71 = arith.select %67, %70, %65 : vector<8x28xi1>, vector<8x28xf32>
    %c0_i32_20 = arith.constant 0 : i32
    %72 = vector.broadcast %c0_i32_20 : i32 to vector<8x28xi32>
    %73 = arith.cmpi eq, %59, %72 : vector<8x28xi32>
    %74 = vector.extract_strided_slice %42 {offsets = [0, 3], sizes = [8, 25], strides = [1, 1]} : vector<8x28xf32> to vector<8x25xf32>
    %75 = vector.extract_strided_slice %42 {offsets = [0, 0], sizes = [8, 3], strides = [1, 1]} : vector<8x28xf32> to vector<8x3xf32>
    %76 = tpu.concatenate %74, %75 in 1 : vector<8x25xf32>, vector<8x3xf32> -> vector<8x28xf32>
    %77 = arith.select %73, %76, %71 : vector<8x28xi1>, vector<8x28xf32>
    %c11_i32 = arith.constant 11 : i32
    %78 = vector.broadcast %c11_i32 : i32 to vector<8x28xi32>
    %79 = arith.cmpi eq, %59, %78 : vector<8x28xi32>
    %80 = vector.extract_strided_slice %42 {offsets = [0, 27], sizes = [8, 1], strides = [1, 1]} : vector<8x28xf32> to vector<8x1xf32>
    %81 = vector.extract_strided_slice %42 {offsets = [0, 0], sizes = [8, 27], strides = [1, 1]} : vector<8x28xf32> to vector<8x27xf32>
    %82 = tpu.concatenate %80, %81 in 1 : vector<8x1xf32>, vector<8x27xf32> -> vector<8x28xf32>
    %83 = arith.select %79, %82, %77 : vector<8x28xi1>, vector<8x28xf32>
    %c12_i32 = arith.constant 12 : i32
    %84 = vector.broadcast %c12_i32 : i32 to vector<8x28xi32>
    %85 = arith.cmpi eq, %59, %84 : vector<8x28xi32>
    %86 = vector.extract_strided_slice %42 {offsets = [0, 26], sizes = [8, 2], strides = [1, 1]} : vector<8x28xf32> to vector<8x2xf32>
    %87 = vector.extract_strided_slice %42 {offsets = [0, 0], sizes = [8, 26], strides = [1, 1]} : vector<8x28xf32> to vector<8x26xf32>
    %88 = tpu.concatenate %86, %87 in 1 : vector<8x2xf32>, vector<8x26xf32> -> vector<8x28xf32>
    %89 = arith.select %85, %88, %83 : vector<8x28xi1>, vector<8x28xf32>
    %c13_i32 = arith.constant 13 : i32
    %90 = vector.broadcast %c13_i32 : i32 to vector<8x28xi32>
    %91 = arith.cmpi eq, %59, %90 : vector<8x28xi32>
    %92 = vector.extract_strided_slice %42 {offsets = [0, 25], sizes = [8, 3], strides = [1, 1]} : vector<8x28xf32> to vector<8x3xf32>
    %93 = vector.extract_strided_slice %42 {offsets = [0, 0], sizes = [8, 25], strides = [1, 1]} : vector<8x28xf32> to vector<8x25xf32>
    %94 = tpu.concatenate %92, %93 in 1 : vector<8x3xf32>, vector<8x25xf32> -> vector<8x28xf32>
    %95 = arith.select %91, %94, %89 : vector<8x28xi1>, vector<8x28xf32>
    %96 = vector.extract_strided_slice %95 {offsets = [0, 26], sizes = [8, 2], strides = [1, 1]} : vector<8x28xf32> to vector<8x2xf32>
    %97 = vector.extract_strided_slice %95 {offsets = [0, 0], sizes = [8, 26], strides = [1, 1]} : vector<8x28xf32> to vector<8x26xf32>
    %98 = tpu.concatenate %96, %97 in 1 : vector<8x2xf32>, vector<8x26xf32> -> vector<8x28xf32>
    %99 = vector.extract_strided_slice %95 {offsets = [0, 27], sizes = [8, 1], strides = [1, 1]} : vector<8x28xf32> to vector<8x1xf32>
    %100 = vector.extract_strided_slice %95 {offsets = [0, 0], sizes = [8, 27], strides = [1, 1]} : vector<8x28xf32> to vector<8x27xf32>
    %101 = tpu.concatenate %99, %100 in 1 : vector<8x1xf32>, vector<8x27xf32> -> vector<8x28xf32>
    %102 = vector.extract_strided_slice %95 {offsets = [0, 1], sizes = [8, 27], strides = [1, 1]} : vector<8x28xf32> to vector<8x27xf32>
    %103 = vector.extract_strided_slice %95 {offsets = [0, 0], sizes = [8, 1], strides = [1, 1]} : vector<8x28xf32> to vector<8x1xf32>
    %104 = tpu.concatenate %102, %103 in 1 : vector<8x27xf32>, vector<8x1xf32> -> vector<8x28xf32>
    %105 = vector.extract_strided_slice %95 {offsets = [0, 2], sizes = [8, 26], strides = [1, 1]} : vector<8x28xf32> to vector<8x26xf32>
    %106 = vector.extract_strided_slice %95 {offsets = [0, 0], sizes = [8, 2], strides = [1, 1]} : vector<8x28xf32> to vector<8x2xf32>
    %107 = tpu.concatenate %105, %106 in 1 : vector<8x26xf32>, vector<8x2xf32> -> vector<8x28xf32>
    %108 = tpu.concatenate %98, %101, %95, %104, %107 in 0 : vector<8x28xf32>, vector<8x28xf32>, vector<8x28xf32>, vector<8x28xf32>, vector<8x28xf32> -> vector<40x28xf32>
    %c1 = arith.constant 1 : index
    %c0_21 = arith.constant 0 : index
    %c0_22 = arith.constant 0 : index
    %109 = vector.load %arg2[%c1, %c0_21, %c0_22] : memref<2x16x40xf32, #tpu.memory_space<vmem>>, vector<1x16x40xf32>
    %110 = vector.shape_cast %109 : vector<1x16x40xf32> to vector<16x40xf32>
    %cst_23 = arith.constant dense<0.000000e+00> : vector<16x28xf32>
    %111 = tpu.matmul %110, %108, %cst_23 {dimension_numbers = #tpu.dot_dimension_numbers<[1], [0], [0], [1], [0, 0, 1, 1], [], []>} : vector<16x40xf32>, vector<40x28xf32>, vector<16x28xf32> -> vector<16x28xf32>
    %c1_24 = arith.constant 1 : index
    %c0_25 = arith.constant 0 : index
    %c0_26 = arith.constant 0 : index
    %112 = vector.load %arg3[%c1_24, %c0_25, %c0_26] : memref<2x16x1xf32, #tpu.memory_space<vmem>>, vector<1x16x1xf32>
    %113 = vector.shape_cast %112 : vector<1x16x1xf32> to vector<16x1xf32>
    %114 = vector.broadcast %113 : vector<16x1xf32> to vector<16x28xf32>
    %115 = arith.addf %111, %114 : vector<16x28xf32>
    %cst_27 = arith.constant 0.000000e+00 : f32
    %116 = vector.broadcast %cst_27 : f32 to vector<16x28xf32>
    %117 = arith.cmpf ogt, %115, %116 : vector<16x28xf32>
    %cst_28 = arith.constant 0.00999999977 : f32
    %118 = vector.broadcast %cst_28 : f32 to vector<16x28xf32>
    %119 = arith.mulf %118, %115 : vector<16x28xf32>
    %120 = arith.select %117, %115, %119 : vector<16x28xi1>, vector<16x28xf32>
    %121 = vector.extract_strided_slice %120 {offsets = [0, 27], sizes = [16, 1], strides = [1, 1]} : vector<16x28xf32> to vector<16x1xf32>
    %122 = vector.extract_strided_slice %120 {offsets = [0, 0], sizes = [16, 27], strides = [1, 1]} : vector<16x28xf32> to vector<16x27xf32>
    %123 = tpu.concatenate %121, %122 in 1 : vector<16x1xf32>, vector<16x27xf32> -> vector<16x28xf32>
    %124 = vector.extract_strided_slice %120 {offsets = [0, 1], sizes = [16, 27], strides = [1, 1]} : vector<16x28xf32> to vector<16x27xf32>
    %125 = vector.extract_strided_slice %120 {offsets = [0, 0], sizes = [16, 1], strides = [1, 1]} : vector<16x28xf32> to vector<16x1xf32>
    %126 = tpu.concatenate %124, %125 in 1 : vector<16x27xf32>, vector<16x1xf32> -> vector<16x28xf32>
    %127 = tpu.concatenate %123, %120, %126 in 0 : vector<16x28xf32>, vector<16x28xf32>, vector<16x28xf32> -> vector<48x28xf32>
    %c1_29 = arith.constant 1 : index
    %c0_30 = arith.constant 0 : index
    %c0_31 = arith.constant 0 : index
    %128 = vector.load %arg4[%c1_29, %c0_30, %c0_31] : memref<2x8x48xf32, #tpu.memory_space<vmem>>, vector<1x8x48xf32>
    %129 = vector.shape_cast %128 : vector<1x8x48xf32> to vector<8x48xf32>
    %cst_32 = arith.constant dense<0.000000e+00> : vector<8x28xf32>
    %130 = tpu.matmul %129, %127, %cst_32 {dimension_numbers = #tpu.dot_dimension_numbers<[1], [0], [0], [1], [0, 0, 1, 1], [], []>} : vector<8x48xf32>, vector<48x28xf32>, vector<8x28xf32> -> vector<8x28xf32>
    %c1_33 = arith.constant 1 : index
    %c0_34 = arith.constant 0 : index
    %c0_35 = arith.constant 0 : index
    %131 = vector.load %arg5[%c1_33, %c0_34, %c0_35] : memref<2x8x1xf32, #tpu.memory_space<vmem>>, vector<1x8x1xf32>
    %132 = vector.shape_cast %131 : vector<1x8x1xf32> to vector<8x1xf32>
    %133 = vector.broadcast %132 : vector<8x1xf32> to vector<8x28xf32>
    %134 = arith.addf %130, %133 : vector<8x28xf32>
    %135 = math.tanh %134 : vector<8x28xf32>
    %136 = arith.addf %95, %135 : vector<8x28xf32>
    %c0_36 = arith.constant 0 : index
    %c0_37 = arith.constant 0 : index
    %137 = vector.load %arg6[%c0_36, %c0_37] : memref<8x28xf32, #tpu.memory_space<vmem>>, vector<8x28xf32>
    tpu.vector_store %arg6[%c0_36, %c0_37], %136 {strides = array<i32>} : memref<8x28xf32, #tpu.memory_space<vmem>>, vector<8x28xf32>,
    return
  }
  func.func @transform_0(%arg0: i32) -> (i32, i32) {
    %c0_i32 = arith.constant 0 : i32
    %c0_i32_0 = arith.constant 0 : i32
    return %c0_i32, %arg0 : i32, i32
  }
  func.func @transform_1(%arg0: i32) -> (i32, i32, i32) {
    %c0_i32 = arith.constant 0 : i32
    %c0_i32_0 = arith.constant 0 : i32
    %c0_i32_1 = arith.constant 0 : i32
    %c0_i32_2 = arith.constant 0 : i32
    return %c0_i32, %c0_i32_0, %c0_i32_1 : i32, i32, i32
  }
  func.func @transform_2(%arg0: i32) -> (i32, i32, i32) {
    %c0_i32 = arith.constant 0 : i32
    %c0_i32_0 = arith.constant 0 : i32
    %c0_i32_1 = arith.constant 0 : i32
    %c0_i32_2 = arith.constant 0 : i32
    return %c0_i32, %c0_i32_0, %c0_i32_1 : i32, i32, i32
  }
  func.func @transform_3(%arg0: i32) -> (i32, i32, i32) {
    %c0_i32 = arith.constant 0 : i32
    %c0_i32_0 = arith.constant 0 : i32
    %c0_i32_1 = arith.constant 0 : i32
    %c0_i32_2 = arith.constant 0 : i32
    return %c0_i32, %c0_i32_0, %c0_i32_1 : i32, i32, i32
  }
  func.func @transform_4(%arg0: i32) -> (i32, i32, i32) {
    %c0_i32 = arith.constant 0 : i32
    %c0_i32_0 = arith.constant 0 : i32
    %c0_i32_1 = arith.constant 0 : i32
    %c0_i32_2 = arith.constant 0 : i32
    return %c0_i32, %c0_i32_0, %c0_i32_1 : i32, i32, i32
  }
  func.func @transform_5(%arg0: i32) -> (i32, i32) {
    %c0_i32 = arith.constant 0 : i32
    %c0_i32_0 = arith.constant 0 : i32
    return %c0_i32, %arg0 : i32, i32
  }
}

</mosaic_0001>

<bundles_post_ra>
// kernel: neg.2
= control target key start
LH: loop header
LB: loop body
LE: loop exit
PB: predicated region body
PF: predicated region fallthrough
CT: control target
= control target key end

     0   :  { %s56_s0 = inlined_call_operand.vmem [shape: f32[4,8,3], index: 0, kind: input, shape index: {}]   ;;  %s57_s1 = inlined_call_operand.vmem [shape: f32[4,8,3], index: 1, kind: output, shape index: {}]  }
   0x1   :  { %v2_v0 = vld [vmem:[%s56_s0] sm:$0xf]  ;;  %v24_v1 = vld [vmem:[%s56_s0 + $0x4] sm:$0xf]  ;;  %v26_v2 = vld [vmem:[%s56_s0 + $0x8] sm:$0xf] }
   0x2   :  { %v5_v3 = vxor.u32 2147483648, %v2_v0  ;;  %v12_v4 = vxor.u32 2147483648, %v24_v1  ;;  %v20_v5 = vxor.u32 2147483648, %v26_v2 }
   0x4   :  { %7 = vst [vmem:[%s57_s1] sm:$0xf] %v5_v3  ;;  %25 = vst [vmem:[%s57_s1 + $0x4] sm:$0xf] %v12_v4 }
   0x5   :  { %27 = vst [vmem:[%s57_s1 + $0x8] sm:$0xf] %v20_v5 }

// kernel: neg.3
= control target key start
LH: loop header
LB: loop body
LE: loop exit
PB: predicated region body
PF: predicated region fallthrough
CT: control target
= control target key end

     0   :  { %s24_s0 = inlined_call_operand.vmem [shape: f32[4], index: 0, kind: input, shape index: {}]   ;;  %s25_s1 = inlined_call_operand.vmem [shape: f32[4], index: 1, kind: output, shape index: {}]  }
   0x1   :  { %v2_v0 = vld [vmem:[%s24_s0] sm:$0x1] }
   0x2   :  { %v5_v1 = vxor.u32 2147483648, %v2_v0 }
   0x4   :  { %7 = vst [vmem:[%s25_s1] sm:$0x1] %v5_v1 }

// kernel: level_scinet_forward.1
= control target key start
LH: loop header
LB: loop body
LE: loop exit
PB: predicated region body
PF: predicated region fallthrough
CT: control target
= control target key end

     0   :  { %s797_s20 = smov 101   ;;  %s798_s21 = smov 102   ;;  %vm68_vm0 = vcmask 326656   ;;  %v801_v2 = vmov 0   ;;  %vm36_vm1 = vcmask 7168   ;;  %vm28_vm2 = vcmask 15360   ;;  %s982_s0 = inlined_call_operand.vmem [shape: f32[8,28], index: 0, kind: input, shape index: {}]   ;;  %s983_s1 = inlined_call_operand.vmem [shape: f32[2,16,40], index: 1, kind: input, shape index: {}]   ;;  %s984_s2 = inlined_call_operand.vmem [shape: f32[2,16,1], index: 2, kind: input, shape index: {}]   ;;  %s985_s4 = inlined_call_operand.vmem [shape: f32[2,8,1], index: 4, kind: input, shape index: {}]   ;;  %s986_s3 = inlined_call_operand.vmem [shape: f32[2,8,48], index: 3, kind: input, shape index: {}]   ;;  %s987_s5 = inlined_call_operand.vmem [shape: f32[8,28], index: 5, kind: output, shape index: {}]  }
   0x1   :  { %v846_v0 = vld [vmem:[%s982_s0] sm:$0xff]  ;;  %s799_s24 = smov 1   ;;  %s800_s0 = smov 2   ;;  %750 = vset.pattern.permute.xlu1 %v801_v2  ;;  %749 = vset.pattern.permute.xlu0 %v801_v2  ;;  %v57_v3 = vld [vmem:[%s984_s2 + $0x8] sm:$0xff]  ;;  %vm44_vm3 = vcmask 220160   ;;  %vm52_vm4 = vcmask 211968   ;;  %v271_v62 = vlaneseq }
   0x2   :  { %30 = vrot.lane.b32.xlu1 %v846_v0, %s797_s20  ;;  %22 = vrot.lane.b32.xlu0 %v846_v0, %s798_s21  ;;  %v54_v1 = vld [vmem:[%s983_s1] sm:$0xff]  ;;  %s802_s25 = smov 27   ;;  %s803_s26 = smov 127   ;;  %v55_v19 = vld [vmem:[%s983_s1 + $0x8] sm:$0xff]  ;;  %v806_v23 = vmov 0.0|0.0   ;;  %vm807_vm7 = vmmov 0  }
   0x3   :  { %651 = vmatprep.mubr.msk.f32.mxu0 %vm68_vm0, %v54_v1  ;;  %s804_s27 = smov 26   ;;  %s805_s28 = smov 126   ;;  %v56_v4 = vld [vmem:[%s984_s2] sm:$0xff]  ;;  %705 = vmatprep.subr.bf16.mxu1 %v806_v23  ;;  %v808_v33 = vmov 0.0   ;;  %vm193_vm8 = vcmask 392192   ;;  %v272_v63 = vand.u32 127, %v271_v62 }
   0x4   :  { %666 = vmatprep.mubr.msk.f32.mxu1 %vm807_vm7, %v808_v33  ;;  %v187_v34 = vld [vmem:[%s985_s4] sm:$0xff]  ;;  %s809_s14 = smov 25   ;;  %s810_s15 = smov 125   ;;  %vm318_vm13 = vcmask 203776  }
   0x5   :  { %v186_v53 = vld [vmem:[%s986_s3] sm:$0xff]  ;;  %s811_s16 = smov 3   ;;  %s812_s17 = smov 103  }
   0x6   :  { %33 = vrot.lane.b32.xlu1 %v846_v0, %s799_s24  ;;  %25 = vrot.lane.b32.xlu0 %v846_v0, %s800_s0 }
   0xa   :  { %41 = vrot.lane.b32.xlu1 %v846_v0, %s802_s25  ;;  %38 = vrot.lane.b32.xlu0 %v846_v0, %s803_s26 }
   0xe   :  { %49 = vrot.lane.b32.xlu1 %v846_v0, %s804_s27  ;;  %46 = vrot.lane.b32.xlu0 %v846_v0, %s805_s28 }
  0x12   :  { %65 = vperm.xlu1 %750, %v57_v3   ;;  %60 = vperm.xlu0 %749, %v56_v4  }
  0x74   :  { %v31_v5 = vpop.permute.xlu1 %30  ;;  %v23_v6 = vpop.permute.xlu0 %22 }
  0x78   :  { %v34_v7 = vpop.permute.xlu1 %33  ;;  %v26_v8 = vpop.permute.xlu0 %25 }
  0x79   :  { %v37_v9 = vsel %vm36_vm1, %v31_v5, %v34_v7  ;;  %v29_v10 = vsel %vm28_vm2, %v23_v6, %v26_v8 }
  0x7a   :  { %v697_v11 = vpack.c.bf16 %v37_v9, %v29_v10 }
  0x7c   :  { %v42_v12 = vpop.permute.xlu1 %41  ;;  %698 = vmatprep.subr.bf16.mxu0 %v697_v11  ;;  %v39_v13 = vpop.permute.xlu0 %38 }
  0x7d   :  { %v45_v14 = vsel %vm44_vm3, %v39_v13, %v42_v12  ;;  %700 = vmatpush3.bf16.msra.mxu0 %v697_v11 }
  0x7e   :  { %v701_v15 = vpack.c.bf16 %v45_v14, %v846_v0 }
  0x80   :  { %702 = vmatprep.subr.bf16.mxu0 %v701_v15  ;;  %v50_v16 = vpop.permute.xlu1 %49  ;;  %v47_v17 = vpop.permute.xlu0 %46 }
  0x81   :  { %704 = vmatpush3.bf16.msra.mxu0 %v701_v15  ;;  %v53_v18 = vsel %vm52_vm4, %v47_v17, %v50_v16 }
  0x82   :  { %649 = vmatprep.subr.mxu0 %v53_v18 }
  0x85   :  { %650 = vmatpush3.msra.mxu0 %v53_v18 }
  0x86   :  { %652 = vmatmul.mubr.msk.f32.vlgmr.msra.gmra.mrb[0].mxu0 %vm68_vm0, %v55_v19 }
  0x91   :  { %v66_v20 = vpop.permute.xlu1 %65  ;;  %v61_v21 = vpop.permute.xlu0 %60 }
 0x159   :  { %v653_v22 = vpop.f32.mrb[0].mxu0 }
 0x15a   :  { %v147_v24 = vadd.f32 %v653_v22, %v66_v20  ;;  %v141_v25 = vpop.f32.mrb[1].mxu0 }
 0x15b   :  { %v142_v26 = vadd.f32 %v141_v25, %v61_v21 }
 0x15c   :  { %vm151_vm5 = vcmp.gt.f32.partialorder %v147_v24, 0.0  ;;  %v153_v27 = vmul.f32 0.01, %v147_v24 }
 0x15d   :  { %vm150_vm6 = vcmp.gt.f32.partialorder %v142_v26, 0.0  ;;  %v152_v28 = vmul.f32 0.01, %v142_v26 }
 0x15e   :  { %v155_v29 = vsel %vm151_vm5, %v147_v24, %v153_v27 }
 0x15f   :  { %v154_v30 = vsel %vm150_vm6, %v142_v26, %v152_v28 }
 0x160   :  { %v756_v31 = vpack.i.bf16 %v155_v29, %v154_v30  ;;  %v709_v32 = vpack.c.bf16 %v155_v29, %v154_v30 }
 0x162   :  { %757 = vrot.lane.b32.xlu0 %v756_v31, %s799_s24  ;;  %752 = vrot.lane.b32.xlu1 %v756_v31, %s797_s20 }
 0x166   :  { %767 = vrot.lane.b32.xlu0 %v756_v31, %s802_s25  ;;  %762 = vrot.lane.b32.xlu1 %v756_v31, %s803_s26 }
 0x16a   :  { %190 = vperm.xlu1 %750, %v187_v34   ;;  %v604_v34 = vld [vmem:[%s983_s1 + $0x10] sm:$0xff] }
 0x16b   :  { %679 = vmatprep.mubr.msk.f32.mxu0 %vm68_vm0, %v604_v34 }
 0x1d4   :  { %v758_v35 = vpop.permute.xlu0 %757  ;;  %v753_v36 = vpop.permute.xlu1 %752 }
 0x1d5   :  { %v760_v37 = vunpack.i.h.bf16 %v758_v35  ;;  %v759_v38 = vunpack.i.l.bf16 %v758_v35  ;;  %v755_v39 = vunpack.i.h.bf16 %v753_v36  ;;  %v754_v40 = vunpack.i.l.bf16 %v753_v36  ;;  %v607_v35 = vld [vmem:[%s984_s2 + $0x18] sm:$0xff]  ;;  %v606_v36 = vld [vmem:[%s984_s2 + $0x10] sm:$0xff] }
 0x1d7   :  { %v170_v41 = vsel %vm36_vm1, %v754_v40, %v759_v38  ;;  %v171_v42 = vsel %vm36_vm1, %v755_v39, %v760_v37 }
 0x1d8   :  { %v768_v43 = vpop.permute.xlu0 %767  ;;  %v763_v44 = vpop.permute.xlu1 %762  ;;  %v706_v45 = vpack.c.bf16 %v171_v42, %v170_v41 }
 0x1d9   :  { %v770_v46 = vunpack.i.h.bf16 %v768_v43  ;;  %v769_v47 = vunpack.i.l.bf16 %v768_v43  ;;  %v765_v48 = vunpack.i.h.bf16 %v763_v44  ;;  %v764_v49 = vunpack.i.l.bf16 %v763_v44 }
 0x1da   :  { %707 = vmatpush3.bf16.msra.mxu1 %v706_v45 }
 0x1db   :  { %708 = vmatprep.subr.bf16.mxu1 %v806_v23  ;;  %v184_v50 = vsel %vm44_vm3, %v764_v49, %v769_v47  ;;  %v185_v51 = vsel %vm44_vm3, %v765_v48, %v770_v46 }
 0x1dc   :  { %v712_v52 = vpack.c.bf16 %v185_v51, %v184_v50  ;;  %v605_v51 = vld [vmem:[%s983_s1 + $0x18] sm:$0xff] }
 0x1de   :  { %710 = vmatpush3.bf16.msra.mxu1 %v709_v32 }
 0x1df   :  { %711 = vmatprep.subr.bf16.mxu1 %v806_v23 }
 0x1e2   :  { %713 = vmatpush3.bf16.msra.mxu1 %v712_v52 }
 0x1e3   :  { %722 = vmatprep.subr.bf16.mxu1 %v806_v23 }
 0x1e5   :  { %667 = vmatmul.mubr.msk.f32.vlgmr.msra.gmra.mrb[0].mxu1 %vm193_vm8, %v186_v53 }
 0x1e6   :  { %694 = vmatprep.mubr.msk.f32.mxu1 %vm807_vm7, %v808_v33 }
 0x1e9   :  { %v191_v54 = vpop.permute.xlu1 %190 }
 0x2b8   :  { %v263_v55 = vpop.f32.mrb[0].mxu1 }
 0x2b9   :  { %v264_v56 = vadd.f32 %v263_v55, %v191_v54  ;;  %v668_v57 = vpop.f32.mrb[1].mxu1 }
 0x2bb   :  { %791 = vtanh.f32 %v264_v56 }
 0x2c5   :  { %v792_v58 = vpop.eup %791 }
 0x2c6   :  { %v268_v59 = vmul.f32 1.442695, %v792_v58 }
 0x2c8   :  { %793 = vpow2.f32 %v268_v59 }
 0x2d2   :  { %v794_v60 = vpop.eup %793 }
 0x2d3   :  { %v270_v61 = vmul.f32 %v794_v60, %v846_v0  ;;  %v915_v0 = vmul.u32.u64.low 2454267026, %v272_v63  ;;  %v916_v1 = vmul.u32.u64.high 2454267026, %v272_v63, %v915_v0 }
 0x2d5   :  { %297 = vrot.lane.b32.xlu1 %v270_v61, %s802_s25  ;;  %294 = vrot.lane.b32.xlu0 %v270_v61, %s803_s26  ;;  %vm279_vm9 = vc.u32 %v915_v0, 2454267026  ;;  %v611_v0 = vld [vmem:[%s985_s4 + $0x8] sm:$0xff] }
 0x2d6   :  { %v280_v3 = vsel %vm279_vm9, 1, %v801_v2  ;;  %vm346_vm9 = vcmask 23552  }
 0x2d7   :  { %v281_v4 = vadd.s32 %v916_v1, %v280_v3 }
 0x2d9   :  { %306 = vrot.lane.b32.xlu1 %v270_v61, %s804_s27  ;;  %303 = vrot.lane.b32.xlu0 %v270_v61, %s805_s28  ;;  %v282_v5 = vshrl.u32 %v281_v4, 3 }
 0x2db   :  { %v283_v6 = vmul.u32 14, %v282_v5 }
 0x2dd   :  { %315 = vrot.lane.b32.xlu1 %v270_v61, %s809_s14  ;;  %312 = vrot.lane.b32.xlu0 %v270_v61, %s810_s15  ;;  %v284_v9 = vsub.s32 %v272_v63, %v283_v6 }
 0x2df   :  { %vm287_vm10 = vcmp.ne.s32.totalorder %v284_v9, 0  ;;  %vm288_vm11 = vcmp.lt.s32.totalorder %v284_v9, 0  ;;  %v290_v12 = vadd.s32 14, %v284_v9 }
 0x2e0   :  { %vm289_vm12 = vmand %vm288_vm11, %vm287_vm10 }
 0x2e1   :  { %325 = vrot.lane.b32.xlu1 %v270_v61, %s799_s24  ;;  %322 = vrot.lane.b32.xlu0 %v270_v61, %s797_s20  ;;  %v291_v15 = vsel %vm289_vm12, %v290_v12, %v284_v9 }
 0x2e2   :  { %vm292_vm14 = vcmp.eq.s32.totalorder %v291_v15, 2  ;;  %vm302_vm15 = vcmp.eq.s32.totalorder %v291_v15, 1  ;;  %vm311_vm5 = vcmp.eq.s32.totalorder %v291_v15, 0  ;;  %vm321_vm6 = vcmp.eq.s32.totalorder %v291_v15, 11 }
 0x2e3   :  { %vm330_vm7 = vcmp.eq.s32.totalorder %v291_v15, 12  ;;  %vm339_vm10 = vcmp.eq.s32.totalorder %v291_v15, 13 }
 0x2e5   :  { %334 = vrot.lane.b32.xlu1 %v270_v61, %s800_s0  ;;  %331 = vrot.lane.b32.xlu0 %v270_v61, %s798_s21 }
 0x2e9   :  { %343 = vrot.lane.b32.xlu1 %v270_v61, %s811_s16  ;;  %340 = vrot.lane.b32.xlu0 %v270_v61, %s812_s17 }
 0x347   :  { %v298_v7 = vpop.permute.xlu1 %297  ;;  %v295_v8 = vpop.permute.xlu0 %294 }
 0x348   :  { %v300_v2 = vsel %vm44_vm3, %v295_v8, %v298_v7 }
 0x349   :  { %v301_v22 = vsel %vm292_vm14, %v300_v2, %v270_v61 }
 0x34b   :  { %v307_v10 = vpop.permute.xlu1 %306  ;;  %v304_v11 = vpop.permute.xlu0 %303 }
 0x34c   :  { %v309_v18 = vsel %vm52_vm4, %v304_v11, %v307_v10 }
 0x34d   :  { %v310_v25 = vsel %vm302_vm15, %v309_v18, %v301_v22 }
 0x34f   :  { %v316_v13 = vpop.permute.xlu1 %315  ;;  %v313_v14 = vpop.permute.xlu0 %312 }
 0x350   :  { %v319_v19 = vsel %vm318_vm13, %v313_v14, %v316_v13 }
 0x351   :  { %v320_v27 = vsel %vm311_vm5, %v319_v19, %v310_v25  ;;  %v610_v19 = vld [vmem:[%s986_s3 + $0x8] sm:$0xff] }
 0x353   :  { %v326_v16 = vpop.permute.xlu1 %325  ;;  %v323_v17 = vpop.permute.xlu0 %322 }
 0x354   :  { %v328_v24 = vsel %vm36_vm1, %v323_v17, %v326_v16 }
 0x355   :  { %v329_v28 = vsel %vm321_vm6, %v328_v24, %v320_v27 }
 0x357   :  { %v335_v20 = vpop.permute.xlu1 %334  ;;  %v332_v21 = vpop.permute.xlu0 %331 }
 0x358   :  { %v337_v26 = vsel %vm28_vm2, %v332_v21, %v335_v20 }
 0x359   :  { %v338_v31 = vsel %vm330_vm7, %v337_v26, %v329_v28 }
 0x35b   :  { %v344_v29 = vpop.permute.xlu1 %343  ;;  %v341_v30 = vpop.permute.xlu0 %340 }
 0x35c   :  { %v347_v32 = vsel %vm346_vm9, %v341_v30, %v344_v29 }
 0x35d   :  { %v924_v33 = vsel %vm339_vm10, %v347_v32, %v338_v31 }
 0x35e   :  { %353 = vrot.lane.b32.xlu1 %v924_v33, %s800_s0  ;;  %350 = vrot.lane.b32.xlu0 %v924_v33, %s798_s21 }
 0x362   :  { %360 = vrot.lane.b32.xlu1 %v924_v33, %s799_s24  ;;  %357 = vrot.lane.b32.xlu0 %v924_v33, %s797_s20 }
 0x366   :  { %367 = vrot.lane.b32.xlu1 %v924_v33, %s802_s25  ;;  %364 = vrot.lane.b32.xlu0 %v924_v33, %s803_s26 }
 0x36a   :  { %374 = vrot.lane.b32.xlu1 %v924_v33, %s804_s27  ;;  %371 = vrot.lane.b32.xlu0 %v924_v33, %s805_s28 }
 0x36e   :  { %391 = vperm.xlu1 %750, %v607_v35   ;;  %386 = vperm.xlu0 %749, %v606_v36  }
 0x3d0   :  { %v354_v37 = vpop.permute.xlu1 %353  ;;  %v351_v38 = vpop.permute.xlu0 %350 }
 0x3d1   :  { %v356_v41 = vsel %vm28_vm2, %v351_v38, %v354_v37 }
 0x3d4   :  { %v361_v39 = vpop.permute.xlu1 %360  ;;  %v358_v40 = vpop.permute.xlu0 %357 }
 0x3d5   :  { %v363_v42 = vsel %vm36_vm1, %v358_v40, %v361_v39 }
 0x3d6   :  { %v714_v43 = vpack.c.bf16 %v363_v42, %v356_v41 }
 0x3d8   :  { %v368_v44 = vpop.permute.xlu1 %367  ;;  %715 = vmatprep.subr.bf16.mxu0 %v714_v43  ;;  %v365_v45 = vpop.permute.xlu0 %364 }
 0x3d9   :  { %v370_v46 = vsel %vm44_vm3, %v365_v45, %v368_v44  ;;  %717 = vmatpush3.bf16.msra.mxu0 %v714_v43 }
 0x3da   :  { %v718_v47 = vpack.c.bf16 %v370_v46, %v924_v33 }
 0x3dc   :  { %v375_v48 = vpop.permute.xlu1 %374  ;;  %719 = vmatprep.subr.bf16.mxu0 %v718_v47  ;;  %v372_v49 = vpop.permute.xlu0 %371 }
 0x3dd   :  { %721 = vmatpush3.bf16.msra.mxu0 %v718_v47  ;;  %v377_v50 = vsel %vm52_vm4, %v372_v49, %v375_v48 }
 0x3de   :  { %677 = vmatprep.subr.mxu0 %v377_v50 }
 0x3e1   :  { %678 = vmatpush3.msra.mxu0 %v377_v50 }
 0x3e2   :  { %680 = vmatmul.mubr.msk.f32.vlgmr.msra.gmra.mrb[2].mxu0 %vm68_vm0, %v605_v51  ;;  %vm595_vm0 = vcmask 228352  }
 0x3ed   :  { %v392_v52 = vpop.permute.xlu1 %391  ;;  %v387_v54 = vpop.permute.xlu0 %386 }
 0x4b5   :  { %v681_v53 = vpop.f32.mrb[2].mxu0 }
 0x4b6   :  { %v472_v55 = vadd.f32 %v681_v53, %v392_v52  ;;  %v466_v56 = vpop.f32.mrb[3].mxu0 }
 0x4b7   :  { %v467_v57 = vadd.f32 %v466_v56, %v387_v54 }
 0x4b8   :  { %vm476_vm2 = vcmp.gt.f32.partialorder %v472_v55, 0.0  ;;  %v478_v58 = vmul.f32 0.01, %v472_v55 }
 0x4b9   :  { %vm475_vm11 = vcmp.gt.f32.partialorder %v467_v57, 0.0  ;;  %v477_v59 = vmul.f32 0.01, %v467_v57 }
 0x4ba   :  { %v480_v60 = vsel %vm476_vm2, %v472_v55, %v478_v58 }
 0x4bb   :  { %v479_v61 = vsel %vm475_vm11, %v467_v57, %v477_v59 }
 0x4bc   :  { %v776_v62 = vpack.i.bf16 %v480_v60, %v479_v61  ;;  %v726_v63 = vpack.c.bf16 %v480_v60, %v479_v61 }
 0x4be   :  { %777 = vrot.lane.b32.xlu1 %v776_v62, %s799_s24  ;;  %772 = vrot.lane.b32.xlu0 %v776_v62, %s797_s20 }
 0x4c2   :  { %787 = vrot.lane.b32.xlu1 %v776_v62, %s802_s25  ;;  %782 = vrot.lane.b32.xlu0 %v776_v62, %s803_s26 }
 0x4c6   :  { %517 = vperm.xlu0 %749, %v611_v0  }
 0x530   :  { %v778_v1 = vpop.permute.xlu1 %777  ;;  %v773_v3 = vpop.permute.xlu0 %772 }
 0x531   :  { %v780_v4 = vunpack.i.h.bf16 %v778_v1  ;;  %v779_v5 = vunpack.i.l.bf16 %v778_v1  ;;  %v775_v6 = vunpack.i.h.bf16 %v773_v3  ;;  %v774_v7 = vunpack.i.l.bf16 %v773_v3 }
 0x533   :  { %v496_v8 = vsel %vm36_vm1, %v775_v6, %v780_v4  ;;  %v495_v9 = vsel %vm36_vm1, %v774_v7, %v779_v5 }
 0x534   :  { %v723_v10 = vpack.c.bf16 %v496_v8, %v495_v9  ;;  %v788_v11 = vpop.permute.xlu1 %787  ;;  %v783_v12 = vpop.permute.xlu0 %782 }
 0x535   :  { %v790_v13 = vunpack.i.h.bf16 %v788_v11  ;;  %v789_v14 = vunpack.i.l.bf16 %v788_v11  ;;  %v785_v15 = vunpack.i.h.bf16 %v783_v12  ;;  %v784_v16 = vunpack.i.l.bf16 %v783_v12 }
 0x536   :  { %724 = vmatpush3.bf16.msra.mxu1 %v723_v10 }
 0x537   :  { %725 = vmatprep.subr.bf16.mxu1 %v806_v23  ;;  %v510_v17 = vsel %vm44_vm3, %v785_v15, %v790_v13  ;;  %v509_v2 = vsel %vm44_vm3, %v784_v16, %v789_v14 }
 0x538   :  { %v729_v18 = vpack.c.bf16 %v510_v17, %v509_v2 }
 0x53a   :  { %727 = vmatpush3.bf16.msra.mxu1 %v726_v63 }
 0x53b   :  { %728 = vmatprep.subr.bf16.mxu1 %v806_v23 }
 0x53e   :  { %730 = vmatpush3.bf16.msra.mxu1 %v729_v18 }
 0x541   :  { %695 = vmatmul.mubr.msk.f32.vlgmr.msra.gmra.mrb[2].mxu1 %vm193_vm8, %v610_v19 }
 0x545   :  { %v518_v20 = vpop.permute.xlu0 %517 }
 0x614   :  { %v589_v21 = vpop.f32.mrb[2].mxu1 }
 0x615   :  { %v590_v22 = vadd.f32 %v589_v21, %v518_v20  ;;  %v696_v24 = vpop.f32.mrb[3].mxu1 }
 0x617   :  { %795 = vtanh.f32 %v590_v22 }
 0x621   :  { %v796_v25 = vpop.eup %795 }
 0x622   :  { %v594_v26 = vadd.f32 %v796_v25, %v924_v33 }
 0x624   :  { %596 = vst.msk [vmem:[%s987_s5] sm:$0xff] %vm595_vm0, %v594_v26 }

</bundles_post_ra>
